<compile_context>
chip_gen: v7x
topology: tpu7x:2x2x1
jax: 0.10.0
libtpu: 0.0.40
codegen_flags: <defaults>
</compile_context>

<pallas_src>
import jax
import jax.numpy as jnp
from jax.experimental import pallas as pl
from jax.experimental.pallas import tpu as pltpu


def _round_up(x, m):
    return ((x + m - 1) // m) * m


def _ffn_agent_amount_kernel(xf_ref, xa_ref,
                             w0f_ref, w0a_ref, b0_ref,
                             w1_ref, b1_ref,
                             w2_ref, b2_ref,
                             wo_ref, bo_ref,
                             o_ref):
    """One batch tile of the MLP: 3 (Linear + ReLU) blocks + output Linear.

    All matmuls run on the MXU with bf16 operands and f32 accumulation.
    The concat of (rxn_fp, agent_input) is fused by splitting W0:
        x @ W0 == xf @ W0[:D_fp] + xa @ W0[D_fp:]
    """
    f32 = jnp.float32

    h = (jnp.dot(xf_ref[...], w0f_ref[...], preferred_element_type=f32)
         + jnp.dot(xa_ref[...], w0a_ref[...], preferred_element_type=f32)
         + b0_ref[...].astype(f32))
    h = jnp.maximum(h, 0.0).astype(w1_ref.dtype)

    h = jnp.dot(h, w1_ref[...], preferred_element_type=f32) + b1_ref[...].astype(f32)
    h = jnp.maximum(h, 0.0).astype(w2_ref.dtype)

    h = jnp.dot(h, w2_ref[...], preferred_element_type=f32) + b2_ref[...].astype(f32)
    h = jnp.maximum(h, 0.0).astype(wo_ref.dtype)

    o = jnp.dot(h, wo_ref[...], preferred_element_type=f32) + bo_ref[...].astype(f32)
    o_ref[...] = o.astype(o_ref.dtype)


def ffn_agent_amount_forward(rxn_fp, agent_input, prepared, num_classes, num_bins,
                             *, block_b=512):
    """Forward pass of FFNAgentAmountHead.

    rxn_fp:      (B, 2*fp_dim)
    agent_input: (B, agent_input_dim)
    prepared:    output of prepare_params (bf16, split W0, lane-padded Wo/bo)
    returns:     (B, num_classes, num_bins) float32
    """
    B, D_fp = rxn_fp.shape
    D_ag = agent_input.shape[1]

    w0f, w0a, b0 = prepared["w0_fp"], prepared["w0_ag"], prepared["b0"]
    w1, b1 = prepared["w1"], prepared["b1"]
    w2, b2 = prepared["w2"], prepared["b2"]
    wo, bo = prepared["wo"], prepared["bo"]

    H = w0f.shape[1]
    O_pad = wo.shape[1]
    O = num_classes * num_bins
    cdt = w0f.dtype
    itemsize = jnp.dtype(cdt).itemsize

    # Batch tile: >= 8 sublanes, up to block_b rows, so each MXU matmul sees a
    # full M dimension and per-grid-step (~0.35us) overhead is amortized.
    TB = min(block_b, _round_up(B, 8))
    B_pad = _round_up(B, TB)
    grid_b = B_pad // TB

    xf = rxn_fp.astype(cdt)
    xa = agent_input.astype(cdt)
    if B_pad != B:
        xf = jnp.pad(xf, ((0, B_pad - B), (0, 0)))
        xa = jnp.pad(xa, ((0, B_pad - B), (0, 0)))

    def tile_spec(cols):
        return pl.BlockSpec((TB, cols), lambda i: (i, 0))

    def resident(arr):
        # Same block every grid step -> stays VMEM-resident (no re-DMA).
        return pl.BlockSpec(arr.shape, lambda i: (0, 0))

    weight_bytes = (w0f.size + w0a.size + b0.size + w1.size + b1.size
                    + w2.size + b2.size + wo.size + bo.size) * itemsize
    flops = 2 * B_pad * (D_fp * H + D_ag * H + 2 * H * H + H * O_pad)
    bytes_accessed = (weight_bytes
                      + (xf.size + xa.size) * itemsize
                      + B_pad * O_pad * 4)

    compiler_kwargs = dict(dimension_semantics=("parallel",))
    vmem_need = (weight_bytes
                 + 2 * TB * (D_fp + D_ag) * itemsize   # double-buffered inputs
                 + 2 * TB * O_pad * 4                  # double-buffered output
                 + (2 << 20))                          # compiler scratch slack
    if vmem_need > (16 << 20):
        # Raise the scoped-VMEM limit only when defaults would not cover it;
        # cap below v7x's 64 MiB physical VMEM.
        compiler_kwargs["vmem_limit_bytes"] = int(min(vmem_need, 60 << 20))

    out = pl.pallas_call(
        _ffn_agent_amount_kernel,
        out_shape=jax.ShapeDtypeStruct((B_pad, O_pad), jnp.float32),
        grid=(grid_b,),
        in_specs=[
            tile_spec(D_fp), tile_spec(D_ag),
            resident(w0f), resident(w0a), resident(b0),
            resident(w1), resident(b1),
            resident(w2), resident(b2),
            resident(wo), resident(bo),
        ],
        out_specs=tile_spec(O_pad),
        compiler_params=pltpu.CompilerParams(**compiler_kwargs),
        cost_estimate=pl.CostEstimate(flops=flops, transcendentals=0,
                                      bytes_accessed=bytes_accessed),
    )(xf, xa, w0f, w0a, b0, w1, b1, w2, b2, wo, bo)

    out = out[:B, :O]                      # drop batch + lane padding
    return out.reshape(-1, num_classes, num_bins)


def init_params(key, fp_dim, agent_input_dim, output_dim, hidden_dim):
    """Deterministic synthetic f32 parameters (shapes match the PyTorch module)."""
    d_in = fp_dim * 2 + agent_input_dim
    mlp_out = agent_input_dim * output_dim  # num_classes * num_bins

    keys = jax.random.split(key, 8)
    scale = 0.05
    return {
        "w0": scale * jax.random.normal(keys[0], (d_in, hidden_dim), jnp.float32),
        "b0": scale * jax.random.normal(keys[1], (1, hidden_dim), jnp.float32),
        "w1": scale * jax.random.normal(keys[2], (hidden_dim, hidden_dim), jnp.float32),
        "b1": scale * jax.random.normal(keys[3], (1, hidden_dim), jnp.float32),
        "w2": scale * jax.random.normal(keys[4], (hidden_dim, hidden_dim), jnp.float32),
        "b2": scale * jax.random.normal(keys[5], (1, hidden_dim), jnp.float32),
        "wo": scale * jax.random.normal(keys[6], (hidden_dim, mlp_out), jnp.float32),
        "bo": scale * jax.random.normal(keys[7], (1, mlp_out), jnp.float32),
    }


def prepare_params(params, fp_dim, compute_dtype=jnp.bfloat16, lane_multiple=128):
    """Split W0 (to fuse the concat), cast to bf16, pad output head to 128 lanes."""
    d_fp = 2 * fp_dim
    wo, bo = params["wo"], params["bo"]
    O = wo.shape[1]
    O_pad = max(lane_multiple, _round_up(O, lane_multiple))
    pad = O_pad - O
    return {
        "w0_fp": params["w0"][:d_fp].astype(compute_dtype),
        "w0_ag": params["w0"][d_fp:].astype(compute_dtype),
        "b0": params["b0"].astype(compute_dtype),
        "w1": params["w1"].astype(compute_dtype),
        "b1": params["b1"].astype(compute_dtype),
        "w2": params["w2"].astype(compute_dtype),
        "b2": params["b2"].astype(compute_dtype),
        "wo": jnp.pad(wo, ((0, 0), (0, pad))).astype(compute_dtype),
        "bo": jnp.pad(bo, ((0, 0), (0, pad))).astype(compute_dtype),
    }


def reference_forward(rxn_fp, agent_input, params, num_classes, num_bins):
    """Pure-JAX f32 reference (exact module semantics) for correctness checking."""
    x = jnp.concatenate([rxn_fp, agent_input], axis=1)
    h = jnp.maximum(x @ params["w0"] + params["b0"], 0.0)
    h = jnp.maximum(h @ params["w1"] + params["b1"], 0.0)
    h = jnp.maximum(h @ params["w2"] + params["b2"], 0.0)
    o = h @ params["wo"] + params["bo"]
    return o.reshape(-1, num_classes, num_bins)


if __name__ == "__main__":
    # Small, module-consistent shapes.
    fp_dim = 16           # rxn_fp has dim fp_dim * 2 = 32
    agent_input_dim = 8   # num_classes
    output_dim = 4        # num_bins
    hidden_dim = 32
    batch = 4

    key = jax.random.PRNGKey(0)
    k_p, k_fp, k_ag = jax.random.split(key, 3)

    params = init_params(k_p, fp_dim, agent_input_dim, output_dim, hidden_dim)
    prepared = prepare_params(params, fp_dim)

    rxn_fp = jax.random.normal(k_fp, (batch, fp_dim * 2), jnp.float32)
    agent_input = jax.random.normal(k_ag, (batch, agent_input_dim), jnp.float32)

    out = ffn_agent_amount_forward(rxn_fp, agent_input, prepared,
                                   num_classes=agent_input_dim,
                                   num_bins=output_dim)
    out = jax.block_until_ready(out)

    ref = reference_forward(rxn_fp, agent_input, params,
                            num_classes=agent_input_dim,
                            num_bins=output_dim)

    assert out.shape == (batch, agent_input_dim, output_dim), out.shape
    # bf16 weights/activations with f32 accumulation vs. pure-f32 reference.
    assert jnp.allclose(out, ref, atol=2e-2, rtol=2e-2), "mismatch vs reference"

    print("KERNEL_OK")
</pallas_src>

<mosaic_0001>
module attributes {stable_mosaic.version = 11 : i64} {
  func.func @_ffn_agent_amount_kernel(%arg0: i32, %arg1: memref<8x32xbf16, #tpu.memory_space<vmem>>, %arg2: memref<8x8xbf16, #tpu.memory_space<vmem>>, %arg3: memref<32x32xbf16, #tpu.memory_space<vmem>>, %arg4: memref<8x32xbf16, #tpu.memory_space<vmem>>, %arg5: memref<1x32xbf16, #tpu.memory_space<vmem>>, %arg6: memref<32x32xbf16, #tpu.memory_space<vmem>>, %arg7: memref<1x32xbf16, #tpu.memory_space<vmem>>, %arg8: memref<32x32xbf16, #tpu.memory_space<vmem>>, %arg9: memref<1x32xbf16, #tpu.memory_space<vmem>>, %arg10: memref<32x128xbf16, #tpu.memory_space<vmem>>, %arg11: memref<1x128xbf16, #tpu.memory_space<vmem>>, %arg12: memref<8x128xf32, #tpu.memory_space<vmem>>) attributes {dimension_semantics = [#tpu.dimension_semantics<parallel>], iteration_bounds = array<i64: 1>, scalar_prefetch = 0 : i64, scratch_operands = 0 : i64, tpu.core_type = #tpu.core_type<tc>, window_params = [{transform_indices = @transform_0, window_bounds = array<i64: 8, 32>}, {transform_indices = @transform_1, window_bounds = array<i64: 8, 8>}, {pipeline_mode = #tpu.pipeline_mode<synchronous>, transform_indices = @transform_2, window_bounds = array<i64: 32, 32>}, {pipeline_mode = #tpu.pipeline_mode<synchronous>, transform_indices = @transform_3, window_bounds = array<i64: 8, 32>}, {pipeline_mode = #tpu.pipeline_mode<synchronous>, transform_indices = @transform_4, window_bounds = array<i64: 1, 32>}, {pipeline_mode = #tpu.pipeline_mode<synchronous>, transform_indices = @transform_5, window_bounds = array<i64: 32, 32>}, {pipeline_mode = #tpu.pipeline_mode<synchronous>, transform_indices = @transform_6, window_bounds = array<i64: 1, 32>}, {pipeline_mode = #tpu.pipeline_mode<synchronous>, transform_indices = @transform_7, window_bounds = array<i64: 32, 32>}, {pipeline_mode = #tpu.pipeline_mode<synchronous>, transform_indices = @transform_8, window_bounds = array<i64: 1, 32>}, {pipeline_mode = #tpu.pipeline_mode<synchronous>, transform_indices = @transform_9, window_bounds = array<i64: 32, 128>}, {pipeline_mode = #tpu.pipeline_mode<synchronous>, transform_indices = @transform_10, window_bounds = array<i64: 1, 128>}, {transform_indices = @transform_11, window_bounds = array<i64: 8, 128>}]} {
    %c0 = arith.constant 0 : index
    %c0_0 = arith.constant 0 : index
    %0 = vector.load %arg1[%c0, %c0_0] : memref<8x32xbf16, #tpu.memory_space<vmem>>, vector<8x32xbf16>
    %c0_1 = arith.constant 0 : index
    %c0_2 = arith.constant 0 : index
    %1 = vector.load %arg3[%c0_1, %c0_2] : memref<32x32xbf16, #tpu.memory_space<vmem>>, vector<32x32xbf16>
    %cst = arith.constant dense<0.000000e+00> : vector<8x32xf32>
    %2 = tpu.matmul %0, %1, %cst {dimension_numbers = #tpu.dot_dimension_numbers<[1], [0], [0], [1], [0, 0, 1, 1], [], []>} : vector<8x32xbf16>, vector<32x32xbf16>, vector<8x32xf32> -> vector<8x32xf32>
    %c0_3 = arith.constant 0 : index
    %c0_4 = arith.constant 0 : index
    %3 = vector.load %arg2[%c0_3, %c0_4] : memref<8x8xbf16, #tpu.memory_space<vmem>>, vector<8x8xbf16>
    %c0_5 = arith.constant 0 : index
    %c0_6 = arith.constant 0 : index
    %4 = vector.load %arg4[%c0_5, %c0_6] : memref<8x32xbf16, #tpu.memory_space<vmem>>, vector<8x32xbf16>
    %cst_7 = arith.constant dense<0.000000e+00> : vector<8x32xf32>
    %5 = tpu.matmul %3, %4, %cst_7 {dimension_numbers = #tpu.dot_dimension_numbers<[1], [0], [0], [1], [0, 0, 1, 1], [], []>} : vector<8x8xbf16>, vector<8x32xbf16>, vector<8x32xf32> -> vector<8x32xf32>
    %6 = arith.addf %2, %5 : vector<8x32xf32>
    %c0_8 = arith.constant 0 : index
    %c0_9 = arith.constant 0 : index
    %7 = vector.load %arg5[%c0_8, %c0_9] : memref<1x32xbf16, #tpu.memory_space<vmem>>, vector<1x32xbf16>
    %8 = arith.extf %7 : vector<1x32xbf16> to vector<1x32xf32>
    %9 = vector.broadcast %8 : vector<1x32xf32> to vector<8x32xf32>
    %10 = arith.addf %6, %9 : vector<8x32xf32>
    %cst_10 = arith.constant 0.000000e+00 : f32
    %11 = vector.broadcast %cst_10 : f32 to vector<8x32xf32>
    %12 = arith.maximumf %10, %11 : vector<8x32xf32>
    %13 = arith.truncf %12 : vector<8x32xf32> to vector<8x32xbf16>
    %c0_11 = arith.constant 0 : index
    %c0_12 = arith.constant 0 : index
    %14 = vector.load %arg6[%c0_11, %c0_12] : memref<32x32xbf16, #tpu.memory_space<vmem>>, vector<32x32xbf16>
    %cst_13 = arith.constant dense<0.000000e+00> : vector<8x32xf32>
    %15 = tpu.matmul %13, %14, %cst_13 {dimension_numbers = #tpu.dot_dimension_numbers<[1], [0], [0], [1], [0, 0, 1, 1], [], []>} : vector<8x32xbf16>, vector<32x32xbf16>, vector<8x32xf32> -> vector<8x32xf32>
    %c0_14 = arith.constant 0 : index
    %c0_15 = arith.constant 0 : index
    %16 = vector.load %arg7[%c0_14, %c0_15] : memref<1x32xbf16, #tpu.memory_space<vmem>>, vector<1x32xbf16>
    %17 = arith.extf %16 : vector<1x32xbf16> to vector<1x32xf32>
    %18 = vector.broadcast %17 : vector<1x32xf32> to vector<8x32xf32>
    %19 = arith.addf %15, %18 : vector<8x32xf32>
    %cst_16 = arith.constant 0.000000e+00 : f32
    %20 = vector.broadcast %cst_16 : f32 to vector<8x32xf32>
    %21 = arith.maximumf %19, %20 : vector<8x32xf32>
    %22 = arith.truncf %21 : vector<8x32xf32> to vector<8x32xbf16>
    %c0_17 = arith.constant 0 : index
    %c0_18 = arith.constant 0 : index
    %23 = vector.load %arg8[%c0_17, %c0_18] : memref<32x32xbf16, #tpu.memory_space<vmem>>, vector<32x32xbf16>
    %cst_19 = arith.constant dense<0.000000e+00> : vector<8x32xf32>
    %24 = tpu.matmul %22, %23, %cst_19 {dimension_numbers = #tpu.dot_dimension_numbers<[1], [0], [0], [1], [0, 0, 1, 1], [], []>} : vector<8x32xbf16>, vector<32x32xbf16>, vector<8x32xf32> -> vector<8x32xf32>
    %c0_20 = arith.constant 0 : index
    %c0_21 = arith.constant 0 : index
    %25 = vector.load %arg9[%c0_20, %c0_21] : memref<1x32xbf16, #tpu.memory_space<vmem>>, vector<1x32xbf16>
    %26 = arith.extf %25 : vector<1x32xbf16> to vector<1x32xf32>
    %27 = vector.broadcast %26 : vector<1x32xf32> to vector<8x32xf32>
    %28 = arith.addf %24, %27 : vector<8x32xf32>
    %cst_22 = arith.constant 0.000000e+00 : f32
    %29 = vector.broadcast %cst_22 : f32 to vector<8x32xf32>
    %30 = arith.maximumf %28, %29 : vector<8x32xf32>
    %31 = arith.truncf %30 : vector<8x32xf32> to vector<8x32xbf16>
    %c0_23 = arith.constant 0 : index
    %c0_24 = arith.constant 0 : index
    %32 = vector.load %arg10[%c0_23, %c0_24] : memref<32x128xbf16, #tpu.memory_space<vmem>>, vector<32x128xbf16>
    %cst_25 = arith.constant dense<0.000000e+00> : vector<8x128xf32>
    %33 = tpu.matmul %31, %32, %cst_25 {dimension_numbers = #tpu.dot_dimension_numbers<[1], [0], [0], [1], [0, 0, 1, 1], [], []>} : vector<8x32xbf16>, vector<32x128xbf16>, vector<8x128xf32> -> vector<8x128xf32>
    %c0_26 = arith.constant 0 : index
    %c0_27 = arith.constant 0 : index
    %34 = vector.load %arg11[%c0_26, %c0_27] : memref<1x128xbf16, #tpu.memory_space<vmem>>, vector<1x128xbf16>
    %35 = arith.extf %34 : vector<1x128xbf16> to vector<1x128xf32>
    %36 = vector.broadcast %35 : vector<1x128xf32> to vector<8x128xf32>
    %37 = arith.addf %33, %36 : vector<8x128xf32>
    %c0_28 = arith.constant 0 : index
    %c0_29 = arith.constant 0 : index
    %38 = vector.load %arg12[%c0_28, %c0_29] : memref<8x128xf32, #tpu.memory_space<vmem>>, vector<8x128xf32>
    tpu.vector_store %arg12[%c0_28, %c0_29], %37 {strides = array<i32>} : memref<8x128xf32, #tpu.memory_space<vmem>>, vector<8x128xf32>,
    return
  }
  func.func @transform_0(%arg0: i32) -> (i32, i32) {
    %c0_i32 = arith.constant 0 : i32
    %c0_i32_0 = arith.constant 0 : i32
    return %arg0, %c0_i32 : i32, i32
  }
  func.func @transform_1(%arg0: i32) -> (i32, i32) {
    %c0_i32 = arith.constant 0 : i32
    %c0_i32_0 = arith.constant 0 : i32
    return %arg0, %c0_i32 : i32, i32
  }
  func.func @transform_2(%arg0: i32) -> (i32, i32) {
    %c0_i32 = arith.constant 0 : i32
    %c0_i32_0 = arith.constant 0 : i32
    %c0_i32_1 = arith.constant 0 : i32
    return %c0_i32, %c0_i32_0 : i32, i32
  }
  func.func @transform_3(%arg0: i32) -> (i32, i32) {
    %c0_i32 = arith.constant 0 : i32
    %c0_i32_0 = arith.constant 0 : i32
    %c0_i32_1 = arith.constant 0 : i32
    return %c0_i32, %c0_i32_0 : i32, i32
  }
  func.func @transform_4(%arg0: i32) -> (i32, i32) {
    %c0_i32 = arith.constant 0 : i32
    %c0_i32_0 = arith.constant 0 : i32
    %c0_i32_1 = arith.constant 0 : i32
    return %c0_i32, %c0_i32_0 : i32, i32
  }
  func.func @transform_5(%arg0: i32) -> (i32, i32) {
    %c0_i32 = arith.constant 0 : i32
    %c0_i32_0 = arith.constant 0 : i32
    %c0_i32_1 = arith.constant 0 : i32
    return %c0_i32, %c0_i32_0 : i32, i32
  }
  func.func @transform_6(%arg0: i32) -> (i32, i32) {
    %c0_i32 = arith.constant 0 : i32
    %c0_i32_0 = arith.constant 0 : i32
    %c0_i32_1 = arith.constant 0 : i32
    return %c0_i32, %c0_i32_0 : i32, i32
  }
  func.func @transform_7(%arg0: i32) -> (i32, i32) {
    %c0_i32 = arith.constant 0 : i32
    %c0_i32_0 = arith.constant 0 : i32
    %c0_i32_1 = arith.constant 0 : i32
    return %c0_i32, %c0_i32_0 : i32, i32
  }
  func.func @transform_8(%arg0: i32) -> (i32, i32) {
    %c0_i32 = arith.constant 0 : i32
    %c0_i32_0 = arith.constant 0 : i32
    %c0_i32_1 = arith.constant 0 : i32
    return %c0_i32, %c0_i32_0 : i32, i32
  }
  func.func @transform_9(%arg0: i32) -> (i32, i32) {
    %c0_i32 = arith.constant 0 : i32
    %c0_i32_0 = arith.constant 0 : i32
    %c0_i32_1 = arith.constant 0 : i32
    return %c0_i32, %c0_i32_0 : i32, i32
  }
  func.func @transform_10(%arg0: i32) -> (i32, i32) {
    %c0_i32 = arith.constant 0 : i32
    %c0_i32_0 = arith.constant 0 : i32
    %c0_i32_1 = arith.constant 0 : i32
    return %c0_i32, %c0_i32_0 : i32, i32
  }
  func.func @transform_11(%arg0: i32) -> (i32, i32) {
    %c0_i32 = arith.constant 0 : i32
    %c0_i32_0 = arith.constant 0 : i32
    return %arg0, %c0_i32 : i32, i32
  }
}

</mosaic_0001>

<bundles_post_ra>
// kernel: tpu_custom_call.1
= control target key start
LH: loop header
LB: loop body
LE: loop exit
PB: predicated region body
PF: predicated region fallthrough
CT: control target
= control target key end

     0   :  { %16 = vsyncpa [#allocation3], 0  ;;  %s892_s0 = inlined_call_operand.hbm [shape: bf16[8,32], index: 0, kind: input, shape index: {}]   ;;  %s893_s1 = inlined_call_operand.hbm [shape: bf16[8,8], index: 1, kind: input, shape index: {}]   ;;  %s894_s2 = inlined_call_operand.hbm [shape: bf16[32,32], index: 2, kind: input, shape index: {}]   ;;  %s895_s3 = inlined_call_operand.hbm [shape: bf16[8,32], index: 3, kind: input, shape index: {}]   ;;  %s896_s4 = inlined_call_operand.vmem [shape: bf16[1,32], index: 4, kind: input, shape index: {}]   ;;  %s897_s5 = inlined_call_operand.vmem [shape: bf16[32,32], index: 5, kind: input, shape index: {}]   ;;  %s898_s6 = inlined_call_operand.vmem [shape: bf16[1,32], index: 6, kind: input, shape index: {}]   ;;  %s899_s7 = inlined_call_operand.hbm [shape: bf16[32,32], index: 7, kind: input, shape index: {}]   ;;  %s900_s8 = inlined_call_operand.hbm [shape: bf16[1,32], index: 8, kind: input, shape index: {}]   ;;  %s901_s9 = inlined_call_operand.vmem [shape: bf16[32,128], index: 9, kind: input, shape index: {}]   ;;  %s902_s10 = inlined_call_operand.vmem [shape: bf16[1,128], index: 10, kind: input, shape index: {}]   ;;  %s903_s11 = inlined_call_operand.hbm [shape: f32[8,128], index: 11, kind: output, shape index: {}]  }
   0x1   :  { %17 = vsyncpa [#allocation6], 0 }
   0x2   :  { %18 = vsyncpa [#allocation9], 0 }
   0x3   :  { %19 = vsyncpa [#allocation12], 0 }
   0x4   :  { %20 = vsyncpa [#allocation4], 0  ;;  %s700_s17 = smov [#allocation5]   ;;  %s701_s19 = smov [#allocation8]  }
   0x5   :  { %s37_s18 = sshll.u32 %s700_s17, 4  ;;  %s59_s20 = sshll.u32 %s701_s19, 4  ;;  %s38_s18 = int_to_ptr.vmem [resolvable:$true] %s37_s18  ;;  %s60_s20 = int_to_ptr.vmem [resolvable:$true] %s59_s20 }
   0x6   :  { %s536_s23 = scalar_lea.hbm %s893_s1, 64 }
   0x7   :  { %p537_p0 = scmp.ne.s32.totalorder %s893_s1, %s536_s23  ;;  %p540_p1 = scmp.lt.u32.totalorder %s536_s23, %s893_s1 }
   0x9   :  { %p542_p2 = pnand %p540_p1, %p537_p0 }
   0xb   :  { %545 = shalt.err (!%p542_p2)
}
   0xc   :  { %s546_s28 = scalar_lea.vmem %s38_s18, 64  ;;  %p551_p4 = scmp.lt.s32.totalorder %s38_s18, %s38_s18 }
   0xd   :  { %p547_p3 = scmp.ne.s32.totalorder %s38_s18, %s546_s28  ;;  %p552_p5 = scmp.lt.s32.totalorder %s546_s28, %s546_s28 }
   0xf   :  { %p553_p6 = por %p552_p5, %p551_p4 }
  0x11   :  { %p554_p7 = pnand %p553_p6, %p547_p3 }
  0x13   :  { %557 = shalt.err (!%p554_p7)
}
  0x14   :  { %40 = dma.hbm_to_vmem [thread:$0]  %s893_s1, 64, %s38_s18, [#allocation6]  }
  0x15   :  { %s558_s14 = scalar_lea.hbm %s895_s3, 64 }
  0x16   :  { %p559_p8 = scmp.ne.s32.totalorder %s895_s3, %s558_s14  ;;  %p562_p9 = scmp.lt.u32.totalorder %s558_s14, %s895_s3 }
  0x18   :  { %p564_p10 = pnand %p562_p9, %p559_p8 }
  0x1a   :  { %567 = shalt.err (!%p564_p10)
}
  0x1b   :  { %s568_s21 = scalar_lea.vmem %s60_s20, 64  ;;  %p573_p12 = scmp.lt.s32.totalorder %s60_s20, %s60_s20 }
  0x1c   :  { %p569_p11 = scmp.ne.s32.totalorder %s60_s20, %s568_s21  ;;  %p574_p13 = scmp.lt.s32.totalorder %s568_s21, %s568_s21 }
  0x1e   :  { %p575_p0 = por %p574_p13, %p573_p12 }
  0x20   :  { %p576_p1 = pnand %p575_p0, %p569_p11 }
  0x22   :  { %579 = shalt.err (!%p576_p1)
}
  0x23   :  { %62 = dma.hbm_to_vmem [thread:$0]  %s895_s3, 64, %s60_s20, [#allocation9]  }
  0x24   :  { %s702_s22 = smov [#allocation2]   ;;  %s703_s24 = smov [#allocation7]  }
  0x25   :  { %s27_s23 = sshll.u32 %s702_s22, 4  ;;  %s46_s25 = sshll.u32 %s703_s24, 4  ;;  %s28_s23 = int_to_ptr.vmem [resolvable:$true] %s27_s23  ;;  %s795_s25 = int_to_ptr.vmem [resolvable:$true] %s46_s25 }
  0x26   :  { %s580_s28 = scalar_lea.hbm %s892_s0, 64 }
  0x27   :  { %p581_p2 = scmp.ne.s32.totalorder %s892_s0, %s580_s28  ;;  %p584_p3 = scmp.lt.u32.totalorder %s580_s28, %s892_s0 }
  0x29   :  { %p586_p4 = pnand %p584_p3, %p581_p2 }
  0x2b   :  { %589 = shalt.err (!%p586_p4)
}
  0x2c   :  { %s590_s3 = scalar_lea.vmem %s28_s23, 64  ;;  %p595_p6 = scmp.lt.s32.totalorder %s28_s23, %s28_s23 }
  0x2d   :  { %p591_p5 = scmp.ne.s32.totalorder %s28_s23, %s590_s3  ;;  %p596_p7 = scmp.lt.s32.totalorder %s590_s3, %s590_s3 }
  0x2f   :  { %p597_p8 = por %p596_p7, %p595_p6 }
  0x31   :  { %p598_p9 = pnand %p597_p8, %p591_p5 }
  0x33   :  { %601 = shalt.err (!%p598_p9)
}
  0x34   :  { %30 = dma.hbm_to_vmem [thread:$0]  %s892_s0, 64, %s28_s23, [#allocation3]  }
  0x35   :  { %s602_s17 = scalar_lea.hbm %s894_s2, 256 }
  0x36   :  { %p603_p10 = scmp.ne.s32.totalorder %s894_s2, %s602_s17  ;;  %p606_p11 = scmp.lt.u32.totalorder %s602_s17, %s894_s2 }
  0x38   :  { %p608_p12 = pnand %p606_p11, %p603_p10 }
  0x3a   :  { %611 = shalt.err (!%p608_p12)
}
  0x3b   :  { %s612_s22 = scalar_lea.vmem %s795_s25, 256  ;;  %p617_p0 = scmp.lt.s32.totalorder %s795_s25, %s795_s25 }
  0x3c   :  { %p613_p13 = scmp.ne.s32.totalorder %s795_s25, %s612_s22  ;;  %p618_p1 = scmp.lt.s32.totalorder %s612_s22, %s612_s22 }
  0x3e   :  { %p619_p2 = por %p618_p1, %p617_p0 }
  0x40   :  { %p620_p3 = pnand %p619_p2, %p613_p13 }
  0x42   :  { %623 = shalt.err (!%p620_p3)
}
  0x43   :  { %s704_s0 = smov 64   ;;  %s705_s23 = smov 4  }
  0x44   :  { %52 = dma.hbm_to_vmem [thread:$0]  %s894_s2, 256, %s795_s25, [#allocation6], %s704_s0, %s704_s0, %s705_s23  }
  0x45   :  { %s706_s27 = smov [#allocation10]   ;;  %s707_s29 = smov [#allocation11]  }
  0x46   :  { %s74_s28 = sshll.u32 %s706_s27, 4  ;;  %s87_s30 = sshll.u32 %s707_s29, 4  ;;  %s75_s28 = int_to_ptr.vmem [resolvable:$true] %s74_s28  ;;  %s88_s30 = int_to_ptr.vmem [resolvable:$true] %s87_s30 }
  0x47   :  { %s624_s3 = scalar_lea.hbm %s899_s7, 256 }
  0x48   :  { %p625_p4 = scmp.ne.s32.totalorder %s899_s7, %s624_s3  ;;  %p628_p5 = scmp.lt.u32.totalorder %s624_s3, %s899_s7 }
  0x4a   :  { %p630_p6 = pnand %p628_p5, %p625_p4 }
  0x4c   :  { %633 = shalt.err (!%p630_p6)
}
  0x4d   :  { %s634_s2 = scalar_lea.vmem %s75_s28, 256  ;;  %p639_p8 = scmp.lt.s32.totalorder %s75_s28, %s75_s28 }
  0x4e   :  { %p635_p7 = scmp.ne.s32.totalorder %s75_s28, %s634_s2  ;;  %p640_p9 = scmp.lt.s32.totalorder %s634_s2, %s634_s2 }
  0x50   :  { %p641_p10 = por %p640_p9, %p639_p8 }
  0x52   :  { %p642_p11 = pnand %p641_p10, %p635_p7 }
  0x54   :  { %645 = shalt.err (!%p642_p11)
}
  0x55   :  { %80 = dma.hbm_to_vmem [thread:$0]  %s899_s7, 256, %s75_s28, [#allocation9], %s704_s0, %s704_s0, %s705_s23  }
  0x56   :  { %s646_s1 = scalar_lea.hbm %s900_s8, 16 }
  0x57   :  { %p647_p12 = scmp.ne.s32.totalorder %s900_s8, %s646_s1  ;;  %p650_p13 = scmp.lt.u32.totalorder %s646_s1, %s900_s8 }
  0x59   :  { %p652_p0 = pnand %p650_p13, %p647_p12 }
  0x5b   :  { %655 = shalt.err (!%p652_p0)
}
  0x5c   :  { %s656_s27 = scalar_lea.vmem %s88_s30, 16  ;;  %s660_s29 = scalar_lea.vmem %s88_s30, 32 }
  0x5d   :  { %p657_p1 = scmp.ne.s32.totalorder %s88_s30, %s656_s27  ;;  %p661_p2 = scmp.lt.s32.totalorder %s88_s30, %s88_s30 }
  0x5e   :  { %p662_p3 = scmp.lt.s32.totalorder %s660_s29, %s656_s27 }
  0x60   :  { %p663_p4 = por %p662_p3, %p661_p2 }
  0x62   :  { %p664_p5 = pnand %p663_p4, %p657_p1 }
  0x64   :  { %667 = shalt.err (!%p664_p5)
}
  0x65   :  { %90 = dma.hbm_to_vmem [thread:$0]  %s900_s8, 16, %s88_s30, [#allocation12]  }
  0x66   :  { %690 = dma.done.wait [#allocation3], 64  }
  0x67   :  { %691 = vsyncadd [#allocation3], 4294967232 }
  0x68   :  { %692 = dma.done.wait [#allocation6], 320  }
  0x69   :  { %693 = vsyncadd [#allocation6], 4294966976 }
  0x6a   :  { %694 = dma.done.wait [#allocation9], 320  }
  0x6b   :  { %695 = vsyncadd [#allocation9], 4294966976 }
  0x6c   :  { %696 = dma.done.wait [#allocation12], 16  }
  0x6d   :  { %697 = vsyncadd [#allocation12], 4294967280  ;;  %v708_v0 = vmov 0.0   ;;  %vm709_vm0 = vmmov 0   ;;  %vm125_vm1 = vcmask 1043456   ;;  %v528_v1 = vld [vmem:[#allocation7] sm:$0xff]   ;;  %v227_v10 = vlaneseq }
  0x6e   :  { %485 = vmatprep.subr.bf16.mxu1 %v708_v0  ;;  %479 = vmatprep.subr.bf16.mxu0 %v708_v0  ;;  %v120_v2 = vld [vmem:[#allocation8] sm:$0xf]  ;;  %vm121_vm2 = vcmask 64512   ;;  %vm181_vm3 = vcmask 261120   ;;  %v119_v4 = vld [vmem:[#allocation5] sm:$0xf] }
  0x6f   :  { %481 = vmatprep.mubr.msk.bf16.mxu0 %vm709_vm0, %v708_v0  ;;  %489 = vmatprep.mubr.msk.bf16.mxu1 %vm709_vm0, %v708_v0  ;;  %v127_v3 = vsel %vm125_vm1, %v120_v2, 0  ;;  %v529_v5 = vld [vmem:[#allocation7 + $0x8] sm:$0xff]   ;;  %v114_v6 = vld [vmem:[#allocation2] sm:$0xf]  ;;  %v531_v8 = vld [vmem:[%s897_s5 + $0x8] sm:$0xff]   ;;  %v228_v11 = vshrl.u32 %v227_v10, 7 }
  0x70   :  { %486 = vmatpush3.bf16.msra.mxu1 %v528_v1  ;;  %480 = vmatpush3.bf16.msra.mxu0 %v127_v3  ;;  %v530_v7 = vld [vmem:[%s897_s5] sm:$0xff]   ;;  %v535_v40 = vld [vmem:[%s901_s9 + $0x8] sm:$0xff]  }
  0x71   :  { %487 = vmatprep.subr.bf16.mxu1 %v708_v0  ;;  %493 = vmatprep.subr.bf16.mxu0 %v708_v0  ;;  %v532_v9 = vld [vmem:[#allocation10] sm:$0xff]   ;;  %v229_v14 = vsub.s32 0, %v228_v11  ;;  %v533_v28 = vld [vmem:[#allocation10 + $0x8] sm:$0xff]   ;;  %v305_v41 = vld [vmem:[#allocation11] sm:$0x1] }
  0x72   :  { %v225_v12 = vld [vmem:[%s896_s4] sm:$0x1]  ;;  %v306_v42 = vunpack.c.l.bf16 %v305_v41 }
  0x73   :  { %482 = vmatmul.mubr.msk.bf16.vlgmr.msra.gmra.mrb[0].mxu0 %vm121_vm2, %v119_v4  ;;  %v226_v13 = vunpack.c.l.bf16 %v225_v12  ;;  %v534_v29 = vld [vmem:[%s901_s9] sm:$0xff]   ;;  %s710_s9 = smov [#allocation13]  }
  0x74   :  { %488 = vmatpush3.bf16.msra.mxu1 %v529_v5  ;;  %497 = vmatprep.mubr.msk.bf16.mxu0 %vm709_vm0, %v708_v0  ;;  %v238_v30 = vld [vmem:[%s898_s6] sm:$0x1]  ;;  %v310_v43 = vrot.slane %v306_v42, %v229_v14  ;;  %s440_s2 = sshll.u32 %s710_s9, 4  ;;  %s441_s2 = int_to_ptr.vmem [resolvable:$true] %s440_s2 }
  0x75   :  { %501 = vmatprep.subr.bf16.mxu1 %v708_v0  ;;  %494 = vmatpush3.bf16.msra.mxu0 %v530_v7  ;;  %v230_v18 = vrot.slane %v226_v13, %v229_v14  ;;  %v239_v31 = vunpack.c.l.bf16 %v238_v30  ;;  %v372_v51 = vld [vmem:[%s902_s10] sm:$0x1]  ;;  %s668_s25 = scalar_lea.vmem %s441_s2, 128  ;;  %p673_p7 = scmp.lt.s32.totalorder %s441_s2, %s441_s2 }
  0x76   :  { %495 = vmatprep.subr.bf16.mxu0 %v708_v0  ;;  %v373_v52 = vunpack.c.l.bf16 %v372_v51  ;;  %p669_p6 = scmp.ne.s32.totalorder %s441_s2, %s668_s25  ;;  %p674_p8 = scmp.lt.s32.totalorder %s668_s25, %s668_s25 }
  0x77   :  { %490 = vmatmul.mubr.msk.bf16.vlgmr.msra.gmra.mrb[0].mxu1 %vm181_vm3, %v114_v6  ;;  %v243_v32 = vrot.slane %v239_v31, %v229_v14 }
  0x78   :  { %505 = vmatprep.mubr.msk.bf16.mxu1 %vm709_vm0, %v708_v0  ;;  %502 = vmatpush3.bf16.msra.mxu1 %v532_v9  ;;  %v377_v53 = vrot.slane %v373_v52, %v229_v14  ;;  %p675_p9 = por %p674_p8, %p673_p7 }
  0x79   :  { %496 = vmatpush3.bf16.msra.mxu0 %v531_v8  ;;  %503 = vmatprep.subr.bf16.mxu1 %v708_v0 }
  0x7a   :  { %509 = vmatprep.subr.bf16.mxu0 %v708_v0  ;;  %p676_p10 = pnand %p675_p9, %p669_p6 }
  0x7c   :  { %504 = vmatpush3.bf16.msra.mxu1 %v533_v28 }
 0x146   :  { %v163_v15 = vpop.f32.mrb[0].mxu0 }
 0x147   :  { %v483_v16 = vpop.f32.mrb[1].mxu0 }
 0x148   :  { %v166_v17 = vpop.f32.mrb[2].mxu0 }
 0x149   :  { %v484_v19 = vpop.f32.mrb[3].mxu0 }
 0x14a   :  { %v219_v20 = vpop.f32.mrb[0].mxu1 }
 0x14b   :  { %v220_v21 = vadd.f32 %v219_v20, %v163_v15  ;;  %v491_v22 = vpop.f32.mrb[1].mxu1 }
 0x14c   :  { %v222_v23 = vpop.f32.mrb[2].mxu1 }
 0x14d   :  { %v231_v24 = vadd.f32 %v230_v18, %v220_v21  ;;  %v492_v25 = vpop.f32.mrb[3].mxu1 }
 0x14f   :  { %v232_v26 = vmax.f32 %v231_v24, 0.0 }
 0x151   :  { %v233_v27 = vpack.c.bf16 %v232_v26, %v232_v26 }
 0x153   :  { %498 = vmatmul.mubr.msk.bf16.vlgmr.msra.gmra.mrb[4].mxu0 %vm181_vm3, %v233_v27 }
 0x154   :  { %513 = vmatprep.mubr.msk.bf16.mxu0 %vm709_vm0, %v708_v0  ;;  %510 = vmatpush3.bf16.msra.mxu0 %v534_v29 }
 0x155   :  { %511 = vmatprep.subr.bf16.mxu0 %v708_v0 }
 0x158   :  { %512 = vmatpush3.bf16.msra.mxu0 %v535_v40 }
 0x226   :  { %v293_v33 = vpop.f32.mrb[4].mxu0 }
 0x227   :  { %v294_v34 = vadd.f32 %v293_v33, %v243_v32  ;;  %v499_v35 = vpop.f32.mrb[5].mxu0 }
 0x228   :  { %v296_v36 = vpop.f32.mrb[6].mxu0 }
 0x229   :  { %v299_v37 = vmax.f32 %v294_v34, 0.0  ;;  %v500_v38 = vpop.f32.mrb[7].mxu0 }
 0x22b   :  { %v300_v39 = vpack.c.bf16 %v299_v37, %v299_v37 }
 0x22d   :  { %506 = vmatmul.mubr.msk.bf16.vlgmr.msra.gmra.mrb[4].mxu1 %vm181_vm3, %v300_v39 }
 0x300   :  { %v360_v44 = vpop.f32.mrb[4].mxu1 }
 0x301   :  { %v361_v45 = vadd.f32 %v360_v44, %v310_v43  ;;  %v507_v46 = vpop.f32.mrb[5].mxu1 }
 0x302   :  { %v363_v47 = vpop.f32.mrb[6].mxu1 }
 0x303   :  { %v366_v48 = vmax.f32 %v361_v45, 0.0  ;;  %v508_v49 = vpop.f32.mrb[7].mxu1 }
 0x305   :  { %v367_v50 = vpack.c.bf16 %v366_v48, %v366_v48 }
 0x307   :  { %514 = vmatmul.mubr.msk.bf16.vlgmr.msra.gmra.mrb[8].mxu0 %vm181_vm3, %v367_v50 }
 0x3da   :  { %v427_v54 = vpop.f32.mrb[8].mxu0 }
 0x3db   :  { %v428_v55 = vadd.f32 %v427_v54, %v377_v53  ;;  %v515_v56 = vpop.f32.mrb[9].mxu0 }
 0x3dc   :  { %v430_v57 = vpop.f32.mrb[10].mxu0 }
 0x3dd   :  { %433 = vst [vmem:[#allocation13] sm:$0xff] %v428_v55  ;;  %v516_v58 = vpop.f32.mrb[11].mxu0 }
 0x3de   :  { %679 = shalt.err (!%p676_p10)
}
 0x3df   :  { %s680_s19 = scalar_lea.hbm %s903_s11, 128 }
 0x3e0   :  { %p681_p11 = scmp.ne.s32.totalorder %s903_s11, %s680_s19  ;;  %p684_p12 = scmp.lt.u32.totalorder %s680_s19, %s903_s11 }
 0x3e2   :  { %p686_p13 = pnand %p684_p12, %p681_p11 }
 0x3e4   :  { %689 = shalt.err (!%p686_p13)
}
 0x3e5   :  { %443 = dma.vmem_to_hbm [thread:$0]  %s441_s2, 128, %s903_s11, [#allocation4]  }
 0x3e6   :  { %698 = dma.done.wait [#allocation4], 128  }
 0x3e7   :  { %699 = vsyncadd [#allocation4], 4294967168 }
 0x3e8   :  { %447 = vsyncpa [#allocation3], 1 }
 0x3e9   :  { %448 = vsyncpa [#allocation6], 1 }
 0x3ea   :  { %449 = vsyncpa [#allocation9], 1 }
 0x3eb   :  { %450 = vsyncpa [#allocation12], 1 }
 0x3ec   :  { %451 = vsyncpa [#allocation4], 1 }

</bundles_post_ra>
